<compile_context>
chip_gen: v6e
topology: v6e:2x2x1
jax: 0.10.0
libtpu: 0.0.40
codegen_flags: <defaults>
</compile_context>

<pallas_src>
import jax
import jax.numpy as jnp
from jax import lax
from jax.experimental import pallas as pl
from jax.experimental.pallas import tpu as pltpu


_NEG_LARGE = -1e30  # finite "-inf" for padded vocab columns (avoids NaN in exp/max)


def _round_up(x, m):
    return (x + m - 1) // m * m


def _make_mlm_kernel(vocab_tile, vocab):
    def kernel(x_ref, w_ref, b_ref, o_ref, m_ref, l_ref):
        j = pl.program_id(1)

        @pl.when(j == 0)
        def _():
            m_ref[...] = jnp.full(m_ref.shape, -jnp.inf, dtype=m_ref.dtype)
            l_ref[...] = jnp.zeros(l_ref.shape, dtype=l_ref.dtype)

        # logits tile on the MXU: bf16 x bf16 -> f32 accumulation, + bias (f32)
        logits = jnp.dot(x_ref[...], w_ref[...],
                         preferred_element_type=jnp.float32) + b_ref[...]

        # mask padded vocab columns (only the last vocab tile can contain them)
        col = j * vocab_tile + lax.broadcasted_iota(jnp.int32, logits.shape, 1)
        logits = jnp.where(col < vocab, logits, _NEG_LARGE)

        # online max / sum-of-exp over the vocab axis (f32, EUP exp)
        m_prev = m_ref[...]
        m_new = jnp.maximum(m_prev, jnp.max(logits, axis=-1, keepdims=True))
        alpha = jnp.exp(m_prev - m_new)
        l_ref[...] = alpha * l_ref[...] + jnp.sum(jnp.exp(logits - m_new),
                                                  axis=-1, keepdims=True)
        m_ref[...] = m_new

        # stash raw (masked) logits into the VMEM-resident output row block
        start = pl.multiple_of(j * vocab_tile, vocab_tile)
        o_ref[:, pl.ds(start, vocab_tile)] = logits.astype(o_ref.dtype)

        # finalize: out = logits - (m + log l) for the whole row block
        @pl.when(j == pl.num_programs(1) - 1)
        def _():
            norm = m_ref[...] + jnp.log(l_ref[...])          # (row_tile, 1) f32
            o_ref[...] = (o_ref[...].astype(jnp.float32) - norm).astype(o_ref.dtype)

    return kernel


def masked_language_model(x, w, b, *, row_tile=None, vocab_tile=None,
                          compute_dtype=jnp.bfloat16, out_dtype=jnp.float32):
    """log_softmax(x @ w + b, axis=-1).

    x: (batch, seq, hidden); w: (hidden, vocab); b: (vocab,).
    Returns (batch, seq, vocab) log-probs in out_dtype.
    """
    batch, seq, hidden = x.shape
    vocab = w.shape[1]
    rows = batch * seq

    # --- tile selection ---------------------------------------------------
    # rows: fill the MXU (128 on v5e, 256 on v6e/v7x) but never exceed row count
    if row_tile is None:
        row_tile = 256
    row_tile = max(8, min(_round_up(row_tile, 8), _round_up(rows, 8)))
    rows_pad = _round_up(rows, row_tile)

    # vocab: lane-dense streaming tiles for W / bias / output
    if vocab_tile is None:
        vocab_tile = 2048
    vocab_tile = max(128, min(_round_up(vocab_tile, 128), _round_up(vocab, 128)))
    vocab_pad = _round_up(vocab, vocab_tile)

    # --- pad & cast operands (bf16 MXU inputs, f32 accumulation) -----------
    x2 = x.reshape(rows, hidden).astype(compute_dtype)
    if rows_pad != rows:
        x2 = jnp.pad(x2, ((0, rows_pad - rows), (0, 0)))
    w2 = w.astype(compute_dtype)
    if vocab_pad != vocab:
        w2 = jnp.pad(w2, ((0, 0), (0, vocab_pad - vocab)))
    b2 = b.astype(jnp.float32).reshape(1, vocab)
    if vocab_pad != vocab:
        b2 = jnp.pad(b2, ((0, 0), (0, vocab_pad - vocab)))

    grid = (rows_pad // row_tile, vocab_pad // vocab_tile)

    # --- explicit VMEM budget (default scoped limit is far below physical) -
    c_bytes = jnp.dtype(compute_dtype).itemsize
    o_bytes = jnp.dtype(out_dtype).itemsize
    need = 2 * (row_tile * hidden * c_bytes          # x tile (double buffered)
                + hidden * vocab_tile * c_bytes      # W tile
                + vocab_tile * 4                     # bias tile
                + row_tile * vocab_pad * o_bytes)    # resident output row block
    vmem_limit = int(min(max(need + (8 << 20), 32 << 20), 100 << 20))

    out = pl.pallas_call(
        _make_mlm_kernel(vocab_tile, vocab),
        out_shape=jax.ShapeDtypeStruct((rows_pad, vocab_pad), out_dtype),
        grid_spec=pltpu.PrefetchScalarGridSpec(
            num_scalar_prefetch=0,
            grid=grid,
            in_specs=[
                pl.BlockSpec((row_tile, hidden), lambda i, j: (i, 0)),     # x tile
                pl.BlockSpec((hidden, vocab_tile), lambda i, j: (0, j)),   # W tile
                pl.BlockSpec((1, vocab_tile), lambda i, j: (0, j)),        # bias tile
            ],
            out_specs=pl.BlockSpec((row_tile, vocab_pad), lambda i, j: (i, 0)),
            scratch_shapes=[pltpu.VMEM((row_tile, 1), jnp.float32),   # running max
                            pltpu.VMEM((row_tile, 1), jnp.float32)],  # running sum-exp
        ),
        compiler_params=pltpu.CompilerParams(
            dimension_semantics=("parallel", "arbitrary"),
            vmem_limit_bytes=vmem_limit,
        ),
    )(x2, w2, b2)

    return out[:rows, :vocab].reshape(batch, seq, vocab)


def _reference(x, w, b, compute_dtype=jnp.bfloat16):
    logits = jnp.dot(x.astype(compute_dtype), w.astype(compute_dtype),
                     preferred_element_type=jnp.float32) + b.astype(jnp.float32)
    return jax.nn.log_softmax(logits, axis=-1)


if __name__ == "__main__":
    key = jax.random.PRNGKey(0)
    kx, kw, kb, kx2 = jax.random.split(key, 4)

    # --- Test 1: small shapes consistent with the module's forward ---------
    batch, seq, hidden, vocab = 2, 8, 32, 128
    bound = 1.0 / (hidden ** 0.5)
    # nn.Linear(hidden, vocab): weight (vocab, hidden), bias (vocab,)
    w_torch = jax.random.uniform(kw, (vocab, hidden), jnp.float32, -bound, bound)
    b_vec = jax.random.uniform(kb, (vocab,), jnp.float32, -bound, bound)
    w = w_torch.T                                   # kernel uses (hidden, vocab)
    x = jax.random.normal(kx, (batch, seq, hidden), jnp.float32)

    out = jax.block_until_ready(masked_language_model(x, w, b_vec))
    ref = _reference(x, w, b_vec)
    assert out.shape == (batch, seq, vocab)
    assert jnp.allclose(out, ref, atol=2e-3, rtol=2e-3), "mismatch vs reference (test 1)"

    # --- Test 2: exercise vocab streaming, vocab padding and row padding ----
    batch2, seq2, hidden2, vocab2 = 2, 12, 32, 300   # rows=24, vocab not /128
    w_b = jax.random.uniform(kw, (hidden2, vocab2), jnp.float32, -bound, bound)
    b_b = jax.random.uniform(kb, (vocab2,), jnp.float32, -bound, bound)
    x_b = jax.random.normal(kx2, (batch2, seq2, hidden2), jnp.float32)

    out2 = jax.block_until_ready(
        masked_language_model(x_b, w_b, b_b, row_tile=16, vocab_tile=128))
    ref2 = _reference(x_b, w_b, b_b)
    assert out2.shape == (batch2, seq2, vocab2)
    assert jnp.allclose(out2, ref2, atol=2e-3, rtol=2e-3), "mismatch vs reference (test 2)"

    print("KERNEL_OK")
</pallas_src>

<mosaic_0001>
module attributes {stable_mosaic.version = 11 : i64} {
  func.func @kernel(%arg0: i32, %arg1: i32, %arg2: memref<16x32xbf16, #tpu.memory_space<vmem>>, %arg3: memref<32x128xbf16, #tpu.memory_space<vmem>>, %arg4: memref<1x128xf32, #tpu.memory_space<vmem>>, %arg5: memref<16x128xf32, #tpu.memory_space<vmem>>, %arg6: memref<16x1xf32, #tpu.memory_space<vmem>>, %arg7: memref<16x1xf32, #tpu.memory_space<vmem>>) attributes {dimension_semantics = [#tpu.dimension_semantics<parallel>, #tpu.dimension_semantics<arbitrary>], iteration_bounds = array<i64: 1, 1>, scalar_prefetch = 0 : i64, scratch_operands = 2 : i64, tpu.core_type = #tpu.core_type<tc>, window_params = [{transform_indices = @transform_0, window_bounds = array<i64: 16, 32>}, {transform_indices = @transform_1, window_bounds = array<i64: 32, 128>}, {transform_indices = @transform_2, window_bounds = array<i64: 1, 128>}, {transform_indices = @transform_3, window_bounds = array<i64: 16, 128>}]} {
    %c0_i32 = arith.constant 0 : i32
    %0 = arith.cmpi eq, %arg1, %c0_i32 : i32
    %1 = arith.extui %0 : i1 to i32
    %c0_i32_0 = arith.constant 0 : i32
    %2 = arith.cmpi ne, %1, %c0_i32_0 : i32
    scf.if %2 {
      %cst_22 = arith.constant 0xFF800000 : f32
      %40 = vector.broadcast %cst_22 : f32 to vector<16x1xf32>
      %c0_23 = arith.constant 0 : index
      %c0_24 = arith.constant 0 : index
      %41 = vector.load %arg6[%c0_23, %c0_24] : memref<16x1xf32, #tpu.memory_space<vmem>>, vector<16x1xf32>
      tpu.vector_store %arg6[%c0_23, %c0_24], %40 {strides = array<i32>} : memref<16x1xf32, #tpu.memory_space<vmem>>, vector<16x1xf32>,
      %cst_25 = arith.constant 0.000000e+00 : f32
      %42 = vector.broadcast %cst_25 : f32 to vector<16x1xf32>
      %c0_26 = arith.constant 0 : index
      %c0_27 = arith.constant 0 : index
      %43 = vector.load %arg7[%c0_26, %c0_27] : memref<16x1xf32, #tpu.memory_space<vmem>>, vector<16x1xf32>
      tpu.vector_store %arg7[%c0_26, %c0_27], %42 {strides = array<i32>} : memref<16x1xf32, #tpu.memory_space<vmem>>, vector<16x1xf32>,
    } else {
    }
    %c0 = arith.constant 0 : index
    %c0_1 = arith.constant 0 : index
    %3 = vector.load %arg2[%c0, %c0_1] : memref<16x32xbf16, #tpu.memory_space<vmem>>, vector<16x32xbf16>
    %c0_2 = arith.constant 0 : index
    %c0_3 = arith.constant 0 : index
    %4 = vector.load %arg3[%c0_2, %c0_3] : memref<32x128xbf16, #tpu.memory_space<vmem>>, vector<32x128xbf16>
    %cst = arith.constant dense<0.000000e+00> : vector<16x128xf32>
    %5 = tpu.matmul %3, %4, %cst {dimension_numbers = #tpu.dot_dimension_numbers<[1], [0], [0], [1], [0, 0, 1, 1], [], []>} : vector<16x32xbf16>, vector<32x128xbf16>, vector<16x128xf32> -> vector<16x128xf32>
    %c0_4 = arith.constant 0 : index
    %c0_5 = arith.constant 0 : index
    %6 = vector.load %arg4[%c0_4, %c0_5] : memref<1x128xf32, #tpu.memory_space<vmem>>, vector<1x128xf32>
    %7 = vector.broadcast %6 : vector<1x128xf32> to vector<16x128xf32>
    %8 = arith.addf %5, %7 : vector<16x128xf32>
    %c128_i32 = arith.constant 128 : i32
    %9 = arith.muli %arg1, %c128_i32 : i32
    %10 = tpu.iota {dimensions = array<i32: 1>} : vector<16x128xi32>
    %11 = vector.broadcast %9 : i32 to vector<16x128xi32>
    %12 = arith.addi %11, %10 : vector<16x128xi32>
    %c128_i32_6 = arith.constant 128 : i32
    %13 = vector.broadcast %c128_i32_6 : i32 to vector<16x128xi32>
    %14 = arith.cmpi slt, %12, %13 : vector<16x128xi32>
    %cst_7 = arith.constant -1.000000e+30 : f32
    %15 = vector.broadcast %cst_7 : f32 to vector<16x128xf32>
    %16 = arith.select %14, %8, %15 : vector<16x128xi1>, vector<16x128xf32>
    %c0_8 = arith.constant 0 : index
    %c0_9 = arith.constant 0 : index
    %17 = vector.load %arg6[%c0_8, %c0_9] : memref<16x1xf32, #tpu.memory_space<vmem>>, vector<16x1xf32>
    %cst_10 = arith.constant dense<0xFF800000> : vector<16xf32>
    %18 = vector.multi_reduction <maximumf>, %16, %cst_10 [1] : vector<16x128xf32> to vector<16xf32>
    %19 = vector.shape_cast %18 : vector<16xf32> to vector<16x1xf32>
    %20 = arith.maximumf %17, %19 : vector<16x1xf32>
    %21 = arith.subf %17, %20 : vector<16x1xf32>
    %22 = math.exp %21 : vector<16x1xf32>
    %c0_11 = arith.constant 0 : index
    %c0_12 = arith.constant 0 : index
    %23 = vector.load %arg7[%c0_11, %c0_12] : memref<16x1xf32, #tpu.memory_space<vmem>>, vector<16x1xf32>
    %24 = arith.mulf %22, %23 : vector<16x1xf32>
    %25 = vector.broadcast %20 : vector<16x1xf32> to vector<16x128xf32>
    %26 = arith.subf %16, %25 : vector<16x128xf32>
    %27 = math.exp %26 : vector<16x128xf32>
    %cst_13 = arith.constant dense<0.000000e+00> : vector<16xf32>
    %28 = vector.multi_reduction <add>, %27, %cst_13 [1] : vector<16x128xf32> to vector<16xf32>
    %29 = vector.shape_cast %28 : vector<16xf32> to vector<16x1xf32>
    %30 = arith.addf %24, %29 : vector<16x1xf32>
    %c0_14 = arith.constant 0 : index
    %c0_15 = arith.constant 0 : index
    %31 = vector.load %arg7[%c0_14, %c0_15] : memref<16x1xf32, #tpu.memory_space<vmem>>, vector<16x1xf32>
    tpu.vector_store %arg7[%c0_14, %c0_15], %30 {strides = array<i32>} : memref<16x1xf32, #tpu.memory_space<vmem>>, vector<16x1xf32>,
    %c0_16 = arith.constant 0 : index
    %c0_17 = arith.constant 0 : index
    %32 = vector.load %arg6[%c0_16, %c0_17] : memref<16x1xf32, #tpu.memory_space<vmem>>, vector<16x1xf32>
    tpu.vector_store %arg6[%c0_16, %c0_17], %20 {strides = array<i32>} : memref<16x1xf32, #tpu.memory_space<vmem>>, vector<16x1xf32>,
    %c128_i32_18 = arith.constant 128 : i32
    %33 = arith.muli %arg1, %c128_i32_18 : i32
    %34 = tpu.assume_multiple %33, 128 : i32
    %c0_19 = arith.constant 0 : index
    %35 = arith.index_cast %34 : i32 to index
    %36 = vector.load %arg5[%c0_19, %35] : memref<16x128xf32, #tpu.memory_space<vmem>>, vector<16x128xf32>
    tpu.vector_store %arg5[%c0_19, %35], %16 {strides = array<i32>} : memref<16x128xf32, #tpu.memory_space<vmem>>, vector<16x128xf32>,
    %c0_i32_20 = arith.constant 0 : i32
    %37 = arith.cmpi eq, %arg1, %c0_i32_20 : i32
    %38 = arith.extui %37 : i1 to i32
    %c0_i32_21 = arith.constant 0 : i32
    %39 = arith.cmpi ne, %38, %c0_i32_21 : i32
    scf.if %39 {
      %c0_22 = arith.constant 0 : index
      %c0_23 = arith.constant 0 : index
      %40 = vector.load %arg6[%c0_22, %c0_23] : memref<16x1xf32, #tpu.memory_space<vmem>>, vector<16x1xf32>
      %c0_24 = arith.constant 0 : index
      %c0_25 = arith.constant 0 : index
      %41 = vector.load %arg7[%c0_24, %c0_25] : memref<16x1xf32, #tpu.memory_space<vmem>>, vector<16x1xf32>
      %42 = math.log %41 : vector<16x1xf32>
      %43 = arith.addf %40, %42 : vector<16x1xf32>
      %c0_26 = arith.constant 0 : index
      %c0_27 = arith.constant 0 : index
      %44 = vector.load %arg5[%c0_26, %c0_27] : memref<16x128xf32, #tpu.memory_space<vmem>>, vector<16x128xf32>
      %45 = vector.broadcast %43 : vector<16x1xf32> to vector<16x128xf32>
      %46 = arith.subf %44, %45 : vector<16x128xf32>
      %c0_28 = arith.constant 0 : index
      %c0_29 = arith.constant 0 : index
      %47 = vector.load %arg5[%c0_28, %c0_29] : memref<16x128xf32, #tpu.memory_space<vmem>>, vector<16x128xf32>
      tpu.vector_store %arg5[%c0_28, %c0_29], %46 {strides = array<i32>} : memref<16x128xf32, #tpu.memory_space<vmem>>, vector<16x128xf32>,
    } else {
    }
    return
  }
  func.func @transform_0(%arg0: i32, %arg1: i32) -> (i32, i32) {
    %c0_i32 = arith.constant 0 : i32
    %c0_i32_0 = arith.constant 0 : i32
    return %arg0, %c0_i32 : i32, i32
  }
  func.func @transform_1(%arg0: i32, %arg1: i32) -> (i32, i32) {
    %c0_i32 = arith.constant 0 : i32
    %c0_i32_0 = arith.constant 0 : i32
    return %c0_i32, %arg1 : i32, i32
  }
  func.func @transform_2(%arg0: i32, %arg1: i32) -> (i32, i32) {
    %c0_i32 = arith.constant 0 : i32
    %c0_i32_0 = arith.constant 0 : i32
    return %c0_i32, %arg1 : i32, i32
  }
  func.func @transform_3(%arg0: i32, %arg1: i32) -> (i32, i32) {
    %c0_i32 = arith.constant 0 : i32
    %c0_i32_0 = arith.constant 0 : i32
    return %arg0, %c0_i32 : i32, i32
  }
}

</mosaic_0001>

<bundles_post_ra>
// kernel: tpu_custom_call.1
= control target key start
LH: loop header
LB: loop body
LE: loop exit
PB: predicated region body
PF: predicated region fallthrough
CT: control target
= control target key end

     0   :  { %8 = vsyncpa [#allocation5], 0  ;;  %s405_s0 = inlined_call_operand.hbm [shape: bf16[16,32], index: 0, kind: input, shape index: {}]   ;;  %s406_s1 = inlined_call_operand.hbm [shape: bf16[32,128], index: 1, kind: input, shape index: {}]   ;;  %s407_s2 = inlined_call_operand.vmem [shape: f32[1,128], index: 2, kind: input, shape index: {}]   ;;  %s408_s3 = inlined_call_operand.hbm [shape: f32[16,128], index: 3, kind: output, shape index: {}]  }
   0x1   :  { %9 = vsyncpa [#allocation8], 0 }
   0x2   :  { %10 = vsyncpa [#allocation6], 0  ;;  %s344_s12 = smov [#allocation4]  }
   0x3   :  { %s16_s13 = sshll.u32 %s344_s12, 4  ;;  %s17_s13 = int_to_ptr.vmem [resolvable:$true] %s16_s13 }
   0x4   :  { %s286_s14 = scalar_lea.vmem %s17_s13, 128  ;;  %p291_p1 = scmp.lt.s32.totalorder %s17_s13, %s17_s13 }
   0x5   :  { %p287_p0 = scmp.ne.s32.totalorder %s17_s13, %s286_s14  ;;  %p292_p2 = scmp.lt.s32.totalorder %s286_s14, %s286_s14 }
   0x7   :  { %p293_p3 = por %p292_p2, %p291_p1 }
   0x9   :  { %p294_p4 = pnand %p293_p3, %p287_p0 }
   0xb   :  { %297 = shalt.err (!%p294_p4)
}
   0xc   :  { %s345_s15 = smov 64   ;;  %s346_s16 = smov 4  }
   0xd   :  { %22 = dma.hbm_to_vmem [thread:$0]  %s405_s0, 128, %s17_s13, [#allocation5], %s345_s15, %s345_s15, %s346_s16  }
   0xe   :  { %s347_s19 = smov [#allocation7]  }
   0xf   :  { %s28_s20 = sshll.u32 %s347_s19, 4  ;;  %s29_s20 = int_to_ptr.vmem [resolvable:$true] %s28_s20 }
  0x10   :  { %s306_s21 = scalar_lea.vmem %s29_s20, 256  ;;  %p311_p6 = scmp.lt.s32.totalorder %s29_s20, %s29_s20 }
  0x11   :  { %p307_p5 = scmp.ne.s32.totalorder %s29_s20, %s306_s21  ;;  %p312_p7 = scmp.lt.s32.totalorder %s306_s21, %s306_s21 }
  0x13   :  { %p313_p8 = por %p312_p7, %p311_p6 }
  0x15   :  { %p314_p9 = pnand %p313_p8, %p307_p5 }
  0x17   :  { %317 = shalt.err (!%p314_p9)
}
  0x18   :  { %34 = dma.hbm_to_vmem [thread:$0]  %s406_s1, 256, %s29_s20, [#allocation8], %s345_s15, %s345_s15, %s346_s16  }
  0x19   :  { %338 = dma.done.wait [#allocation5], 128  }
  0x1a   :  { %339 = vsyncadd [#allocation5], 4294967168 }
  0x1b   :  { %340 = dma.done.wait [#allocation8], 256  }
  0x1c   :  { %341 = vsyncadd [#allocation8], 4294967040  ;;  %vm48_vm0 = vcmask 7168   ;;  %v348_v0 = vmov 0.0   ;;  %vm349_vm1 = vmmov 0   ;;  %v263_v1 = vld [vmem:[#allocation7 + $0x8] sm:$0xff]  }
  0x1d   :  { %51 = vst.msk [vmem:[#allocation3] sm:$0xff] %vm48_vm0, %v348_v0  ;;  %52 = vst.msk [vmem:[#allocation3 + $0x8] sm:$0xff] %vm48_vm0, %v348_v0  ;;  %242 = vmatprep.subr.bf16.mxu0 %v348_v0  ;;  %246 = vmatprep.mubr.msk.bf16.mxu0 %vm349_vm1, %v348_v0  ;;  %v264_v2 = vld [vmem:[#allocation7] sm:$0xff]   ;;  %v265_v3 = vld [vmem:[#allocation4] sm:$0xff]   ;;  %vm83_vm2 = vcmask 261120   ;;  %v350_v4 = vmov -inf  }
  0x1e   :  { %243 = vmatpush3.bf16.msra.mxu0 %v263_v1  ;;  %49 = vst.msk [vmem:[#allocation2] sm:$0xff] %vm48_vm0, %v350_v4  ;;  %50 = vst.msk [vmem:[#allocation2 + $0x8] sm:$0xff] %vm48_vm0, %v350_v4  ;;  %v234_v5 = vld [vmem:[%s407_s2] ss:$0 sm:$0xff]  ;;  %v351_v12 = vmov 0   ;;  %s352_s2 = smov [#allocation9]  }
  0x1f   :  { %244 = vmatprep.subr.bf16.mxu0 %v348_v0  ;;  %261 = vset.pattern.permute.xlu1 %v351_v12  ;;  %s220_s24 = sshll.u32 %s352_s2, 4  ;;  %s221_s24 = int_to_ptr.vmem [resolvable:$true] %s220_s24 }
  0x20   :  { %262 = vset.pattern.permute.xlu0 %v351_v12  ;;  %s318_s25 = scalar_lea.vmem %s221_s24, 256  ;;  %p323_p11 = scmp.lt.s32.totalorder %s221_s24, %s221_s24 }
  0x21   :  { %p319_p10 = scmp.ne.s32.totalorder %s221_s24, %s318_s25  ;;  %p324_p12 = scmp.lt.s32.totalorder %s318_s25, %s318_s25 }
  0x22   :  { %245 = vmatpush3.bf16.msra.mxu0 %v264_v2 }
  0x23   :  { %p325_p13 = por %p324_p12, %p323_p11 }
  0x24   :  { %v150_v32 = vld [vmem:[#allocation3] sm:$0xff]  ;;  %v151_v36 = vld [vmem:[#allocation3 + $0x8] sm:$0xff] }
  0x25   :  { %247 = vmatmul.mubr.msk.bf16.vlgmr.msra.gmra.mxu0 %vm83_vm2, %v265_v3  ;;  %v136_v13 = vld [vmem:[#allocation2] sm:$0xff]  ;;  %v137_v16 = vld [vmem:[#allocation2 + $0x8] sm:$0xff]  ;;  %p326_p0 = pnand %p325_p13, %p319_p10 }
  0xe5   :  { %v121_v6 = vpop.f32.mrf.mxu0 }
  0xe6   :  { %v388_v7 = vadd.f32 %v234_v5, %v121_v6 }
  0xe7   :  { %v248_v8 = vpop.f32.mrf.mxu0 }
  0xe8   :  { %138 = vmax.xlane.f32.xlu0 %v388_v7 }
  0xe9   :  { %v124_v9 = vpop.f32.mrf.mxu0 }
  0xea   :  { %v391_v10 = vadd.f32 %v234_v5, %v124_v9 }
  0xeb   :  { %v249_v11 = vpop.f32.mrf.mxu0 }
  0xec   :  { %140 = vmax.xlane.f32.xlu0 %v391_v10 }
 0x171   :  { %v139_v14 = vpop.xlane.xlu0 %138 }
 0x172   :  { %v142_v15 = vmax.f32 %v136_v13, %v139_v14 }
 0x174   :  { %v144_v17 = vsub.f32 %v136_v13, %v142_v15  ;;  %179 = vst.msk [vmem:[#allocation2] sm:$0xff] %vm48_vm0, %v142_v15  ;;  %156 = vperm.xlu1 %261, %v142_v15  }
 0x175   :  { %v141_v18 = vpop.xlane.xlu0 %140 }
 0x176   :  { %v143_v19 = vmax.f32 %v137_v16, %v141_v18  ;;  %v146_v29 = vmul.f32 1.442695, %v144_v17 }
 0x178   :  { %v145_v20 = vsub.f32 %v137_v16, %v143_v19  ;;  %180 = vst.msk [vmem:[#allocation2 + $0x8] sm:$0xff] %vm48_vm0, %v143_v19  ;;  %161 = vperm.xlu1 %261, %v143_v19  }
 0x17a   :  { %v148_v30 = vmul.f32 1.442695, %v145_v20 }
 0x17b   :  { %v189_v45 = vld [vmem:[#allocation2] sm:$0xff] }
 0x17f   :  { %v190_v49 = vld [vmem:[#allocation2 + $0x8] sm:$0xff] }
 0x1ef   :  { %v157_v21 = vpop.permute.xlu1 %156 }
 0x1f0   :  { %v164_v22 = vsub.f32 %v388_v7, %v157_v21 }
 0x1f2   :  { %v166_v23 = vmul.f32 1.442695, %v164_v22 }
 0x1f3   :  { %v162_v24 = vpop.permute.xlu1 %161 }
 0x1f4   :  { %266 = vpow2.f32 %v166_v23  ;;  %v165_v25 = vsub.f32 %v391_v10, %v162_v24 }
 0x1f6   :  { %v168_v26 = vmul.f32 1.442695, %v165_v25 }
 0x1f8   :  { %268 = vpow2.f32 %v168_v26 }
 0x1f9   :  { %270 = vpow2.f32 %v146_v29 }
 0x1fa   :  { %272 = vpow2.f32 %v148_v30 }
 0x201   :  { %v267_v27 = vpop.eup %266 }
 0x202   :  { %170 = vadd.xlane.f32.xlu0 %v267_v27 }
 0x205   :  { %v269_v28 = vpop.eup %268 }
 0x206   :  { %172 = vadd.xlane.f32.xlu1 %v269_v28  ;;  %v271_v31 = vpop.eup %270 }
 0x207   :  { %v152_v33 = vmul.f32 %v271_v31, %v150_v32  ;;  %v273_v34 = vpop.eup %272 }
 0x208   :  { %v153_v38 = vmul.f32 %v273_v34, %v151_v36 }
 0x28b   :  { %v171_v35 = vpop.xlane.xlu0 %170 }
 0x28c   :  { %v174_v37 = vadd.f32 %v171_v35, %v152_v33 }
 0x28e   :  { %177 = vst.msk [vmem:[#allocation3] sm:$0xff] %vm48_vm0, %v174_v37 }
 0x28f   :  { %v173_v39 = vpop.xlane.xlu1 %172 }
 0x290   :  { %v175_v40 = vadd.f32 %v173_v39, %v153_v38 }
 0x292   :  { %178 = vst.msk [vmem:[#allocation3 + $0x8] sm:$0xff] %vm48_vm0, %v175_v40 }
 0x295   :  { %v191_v41 = vld [vmem:[#allocation3] sm:$0xff] }
 0x296   :  { %274 = vlog2.f32 %v191_v41 }
 0x299   :  { %v192_v42 = vld [vmem:[#allocation3 + $0x8] sm:$0xff] }
 0x29a   :  { %276 = vlog2.f32 %v192_v42 }
 0x2a3   :  { %v275_v43 = vpop.eup %274 }
 0x2a4   :  { %v194_v44 = vmul.f32 0.6931472, %v275_v43 }
 0x2a6   :  { %v197_v46 = vadd.f32 %v194_v44, %v189_v45 }
 0x2a7   :  { %v277_v47 = vpop.eup %276 }
 0x2a8   :  { %203 = vperm.xlu0 %262, %v197_v46   ;;  %v196_v48 = vmul.f32 0.6931472, %v277_v47 }
 0x2aa   :  { %v198_v50 = vadd.f32 %v196_v48, %v190_v49 }
 0x2ac   :  { %208 = vperm.xlu1 %261, %v198_v50  }
 0x323   :  { %v204_v51 = vpop.permute.xlu0 %203 }
 0x324   :  { %v211_v52 = vsub.f32 %v388_v7, %v204_v51 }
 0x326   :  { %213 = vst [vmem:[#allocation9] sm:$0xff] %v211_v52 }
 0x327   :  { %v209_v53 = vpop.permute.xlu1 %208 }
 0x328   :  { %v212_v54 = vsub.f32 %v391_v10, %v209_v53 }
 0x32a   :  { %214 = vst [vmem:[#allocation9 + $0x8] sm:$0xff] %v212_v54 }
 0x32b   :  { %329 = shalt.err (!%p326_p0)
}
 0x32c   :  { %s353_s26 = smov 128   ;;  %s354_s27 = smov 8  }
 0x32d   :  { %226 = dma.vmem_to_hbm [thread:$0]  %s221_s24, 256, %s408_s3, [#allocation6], %s353_s26, %s353_s26, %s354_s27  }
 0x32e   :  { %342 = dma.done.wait [#allocation6], 256  }
 0x32f   :  { %343 = vsyncadd [#allocation6], 4294967040 }
 0x330   :  { %230 = vsyncpa [#allocation5], 1 }
 0x331   :  { %231 = vsyncpa [#allocation8], 1 }
 0x332   :  { %232 = vsyncpa [#allocation6], 1 }

</bundles_post_ra>
